<compile_context>
chip_gen: v7x
topology: tpu7x:2x2x1
jax: 0.10.0
libtpu: 0.0.40
codegen_flags: <defaults>
</compile_context>

<pallas_src>
import jax
import jax.numpy as jnp
from jax.experimental import pallas as pl
from jax.experimental.pallas import tpu as pltpu

BETA = 0.7   # self.beta
M2   = 0.25  # mass^2 inside the action callable
LAM  = 0.1   # quartic coupling inside the action callable


# ---------------------------------------------------------------------------
# shared per-site algebra (used by both kernel variants)
# ---------------------------------------------------------------------------
def _site_terms(phi, p):
    ma = p[0:1, :]          # mask * a
    mb = p[1:2, :]          # mask * b
    two_mb = p[2:3, :]      # 2 * mask * b
    wobs = p[3:4, :]        # mask / sum(mask)   (0 if mask empty)
    ma_up = p[4:5, :]       # pltpu.roll(mask*a, 1)  (device-rolled, same primitive)
    mb_up = p[5:6, :]       # pltpu.roll(mask*b, 1)

    up = pltpu.roll(phi, 1, 1)      # the only in-kernel roll of sample data
    p2 = phi * phi
    up2 = up * up

    v = ma + mb * p2                # Im(phi_tilde)
    vp = ma_up + mb_up * up2        # Im(phi_tilde) at the rolled neighbor (no roll)
    d = up - phi                    # Re(dz)
    di = vp - v                     # Im(dz)
    v2 = v * v
    pv = phi * v
    sq_r = p2 - v2                  # Re(phi_tilde^2)
    sq_i = 2.0 * pv                 # Im(phi_tilde^2)

    # per-site Re(Stilde - S0) and Im(Stilde) integrands (exact algebra):
    #   Re(dz^2) - d^2 = -di^2 ; Re(z^2) - phi^2 = -v^2 ;
    #   Re(z^4) - phi^4 = v^2*(v^2 - 6*phi^2)
    diff_r = -0.5 * (di * di) - (0.5 * M2) * v2 + LAM * v2 * (v2 - 6.0 * p2)
    integ_i = d * di + M2 * pv + (2.0 * LAM) * sq_r * sq_i

    ji = two_mb * phi               # Im(J_xx); Re(J_xx) = 1
    return diff_r, integ_i, wobs * sq_r, wobs * sq_i, ji, up


def _store_out(o_ref, out_r, out_i):
    # single unmasked full-block store instead of two masked (tb,1) stores
    col = jax.lax.broadcasted_iota(jnp.int32, o_ref.shape, 1)
    o_ref[...] = jnp.where(col == 0, out_r, out_i)


# ---------------------------------------------------------------------------
# preferred kernel: log/phase-domain detJ (no butterfly, 1 roll, 4 reductions)
# ---------------------------------------------------------------------------
def cp_kernel_logdet(phi_ref, p_ref, o_ref):
    phi = phi_ref[...]
    p = p_ref[...]
    diff_r, integ_i, obs_rx, obs_ix, ji, _ = _site_terms(phi, p)

    # log|detJ| and arg(detJ) folded into the reweighting exponent / phase.
    mag_x = 0.5 * jnp.log1p(ji * ji) - BETA * diff_r      # log magnitude integrand
    ph_x = jnp.arctan(ji) - BETA * integ_i                # phase integrand

    mag = jnp.sum(mag_x, axis=-1, keepdims=True)          # log|detJ * e^{-(St-S0)}|
    theta = jnp.sum(ph_x, axis=-1, keepdims=True)         # arg(detJ * e^{-(St-S0)})
    obs_r = jnp.sum(obs_rx, axis=-1, keepdims=True)
    obs_i = jnp.sum(obs_ix, axis=-1, keepdims=True)

    e = jnp.exp(mag)
    wr = e * jnp.cos(theta)
    wi = e * jnp.sin(theta)
    out_r = obs_r * wr - obs_i * wi
    out_i = obs_r * wi + obs_i * wr
    _store_out(o_ref, out_r, out_i)


# ---------------------------------------------------------------------------
# fallback kernel: complex lane-butterfly detJ (used if atan/log1p don't lower)
# ---------------------------------------------------------------------------
def cp_kernel_butterfly(phi_ref, p_ref, o_ref):
    phi = phi_ref[...]
    p = p_ref[...]
    L = phi.shape[-1]
    diff_r, integ_i, obs_rx, obs_ix, ji, up = _site_terms(phi, p)

    # Reduce action / observable terms FIRST so only jr/ji (+ roll temps) stay
    # live across the long butterfly dependency chain.
    ds_r = BETA * jnp.sum(diff_r, axis=-1, keepdims=True)   # Re(Stilde) - S0
    st_i = BETA * jnp.sum(integ_i, axis=-1, keepdims=True)  # Im(Stilde)
    obs_r = jnp.sum(obs_rx, axis=-1, keepdims=True)
    obs_i = jnp.sum(obs_ix, axis=-1, keepdims=True)

    # detJ = prod_x (1 + i*ji_x) via lane butterfly (L power of 2); first stage
    # peeled, its roll replaced by the precomputed rolled param row.
    ri = p[6:7, :] * up             # == pltpu.roll(ji, 1, 1), no extra roll
    jr = 1.0 - ji * ri
    ji = ji + ri
    shift = 2
    while shift < L:
        rr = pltpu.roll(jr, shift, 1)
        ri = pltpu.roll(ji, shift, 1)
        jr, ji = jr * rr - ji * ri, jr * ri + ji * rr
        shift *= 2
    det_r = jr[:, 0:1]
    det_i = ji[:, 0:1]

    e = jnp.exp(-ds_r)
    w_r = e * jnp.cos(st_i)
    w_i = -e * jnp.sin(st_i)
    t_r = obs_r * det_r - obs_i * det_i
    t_i = obs_r * det_i + obs_i * det_r
    out_r = t_r * w_r - t_i * w_i
    out_i = t_r * w_i + t_i * w_r
    _store_out(o_ref, out_r, out_i)


# ---------------------------------------------------------------------------
# host-side helpers
# ---------------------------------------------------------------------------
def _roll1_kernel(x_ref, o_ref):
    o_ref[...] = pltpu.roll(x_ref[...], 1, 1)


def _pack_params(a, b, mask, L):
    """One aligned (8, L) block of per-site parameters (+ pre-rolled rows)."""
    a1 = a.reshape(L).astype(jnp.float32)
    b1 = b.reshape(L).astype(jnp.float32)
    m1 = mask.reshape(L).astype(jnp.float32)
    nm = jnp.sum(m1)
    inv_nm = jnp.where(nm > 0, 1.0 / jnp.maximum(nm, 1e-30), 0.0)  # empty-mask guard

    base = jnp.zeros((8, L), jnp.float32)
    base = base.at[0].set(m1 * a1)          # m*a
    base = base.at[1].set(m1 * b1)          # m*b
    base = base.at[2].set(2.0 * m1 * b1)    # 2*m*b
    base = base.at[3].set(m1 * inv_nm)      # obs weights m/sum(m)

    # Rolled copies produced with the SAME pltpu.roll primitive as the main
    # kernel, so neighbor indexing is consistent regardless of roll direction.
    rolled = pl.pallas_call(
        _roll1_kernel,
        out_shape=jax.ShapeDtypeStruct((8, L), jnp.float32),
    )(base)
    packed = base.at[4].set(rolled[0])      # roll(m*a)
    packed = packed.at[5].set(rolled[1])    # roll(m*b)
    packed = packed.at[6].set(rolled[2])    # roll(2*m*b)
    return packed


def _probe_log_detj_support():
    """Check that arctan/log1p lower and are accurate on this Mosaic build."""
    def probe_kernel(x_ref, o_ref):
        x = x_ref[...]
        o_ref[...] = jnp.arctan(x) + 0.5 * jnp.log1p(x * x)

    try:
        x = (jnp.arange(8 * 128, dtype=jnp.float32).reshape(8, 128) / 1024.0) - 0.5
        y = pl.pallas_call(
            probe_kernel,
            out_shape=jax.ShapeDtypeStruct((8, 128), jnp.float32),
        )(x)
        y = jax.block_until_ready(y)
        want = jnp.arctan(x) + 0.5 * jnp.log1p(x * x)
        return bool(jnp.max(jnp.abs(y - want)) < 1e-5)
    except Exception:
        return False


_LOG_DETJ_OK = None


def _use_log_detj():
    global _LOG_DETJ_OK
    if _LOG_DETJ_OK is None:
        _LOG_DETJ_OK = _probe_log_detj_support()
    return _LOG_DETJ_OK


def _pick_tile_b(B, cap):
    """Largest multiple-of-8 divisor of B (<= cap); prefer an EVEN grid-step
    count so a 2-TensorCore chip (v7x) uses both cores; on single-core
    v5e/v6e this costs at most one extra ~0.35us step."""
    divs = [t for t in range(8, min(B, cap) + 1, 8) if B % t == 0]
    if not divs:
        return B                       # B < 8 or not a multiple of 8: one block
    even = [t for t in divs if (B // t) % 2 == 0]
    return max(even) if even else max(divs)


def cp_forward(phi, a, b, mask, *, tile_b=1024):
    """Pallas CP.forward: returns (B, 2) with [:,0]=Re(O), [:,1]=Im(O)."""
    B, L = phi.shape
    assert (L & (L - 1)) == 0 and L >= 2, "L must be a power of 2"

    packed = _pack_params(a, b, mask, L)
    tb = _pick_tile_b(B, tile_b)
    kernel = cp_kernel_logdet if _use_log_detj() else cp_kernel_butterfly

    return pl.pallas_call(
        kernel,
        out_shape=jax.ShapeDtypeStruct((B, 2), jnp.float32),
        grid_spec=pltpu.PrefetchScalarGridSpec(
            num_scalar_prefetch=0,
            grid=(B // tb,),
            in_specs=[
                pl.BlockSpec((tb, L), lambda i: (i, 0)),   # phi (batch-tiled)
                pl.BlockSpec((8, L), lambda i: (0, 0)),    # packed params (invariant)
            ],
            out_specs=pl.BlockSpec((tb, 2), lambda i: (i, 0)),
        ),
        compiler_params=pltpu.CompilerParams(
            dimension_semantics=("parallel",)),
    )(phi.astype(jnp.float32), packed)


def cp_reference(phi, a, b, mask):
    """Pure-JAX reference (complex64) mirroring the PyTorch CP.forward."""
    def S(z):
        zp = jnp.roll(z, 1, axis=-1)
        integ = 0.5 * (zp - z) ** 2 + 0.5 * M2 * z ** 2 + LAM * z ** 4
        return BETA * jnp.sum(integ, axis=-1)
    s0 = S(phi)                                               # real
    phi_t = phi + 1j * (mask * (a + b * phi ** 2))            # complexify
    detJ = jnp.prod(1.0 + 1j * (2.0 * mask * b * phi), axis=-1)
    st = S(phi_t)                                             # complex
    obs = jnp.sum(mask * phi_t ** 2, axis=-1) / jnp.sum(mask)
    return obs * detJ * jnp.exp(-(st - s0))


if __name__ == "__main__":
    B, L = 256, 128
    key = jax.random.PRNGKey(0)
    phi = 0.5 * jax.random.normal(key, (B, L), dtype=jnp.float32)

    # Deterministic deformation parameters and observable mask.
    x = jnp.arange(L, dtype=jnp.float32)
    a = 0.04 + 0.02 * jnp.cos(2.0 * jnp.pi * x / L)
    b = 0.03 + 0.01 * jnp.sin(2.0 * jnp.pi * x / L)
    mask = (x < (L // 2)).astype(jnp.float32)

    out = cp_forward(phi, a, b, mask)
    out = jax.block_until_ready(out)

    ref = cp_reference(phi.astype(jnp.float32), a, b, mask)
    ref2 = jnp.stack([jnp.real(ref), jnp.imag(ref)], axis=-1)
    max_err = float(jnp.max(jnp.abs(out - ref2)))
    assert max_err < 1e-3, f"mismatch vs reference: {max_err}"

    print("KERNEL_OK")
</pallas_src>

<mosaic_0001>
module attributes {stable_mosaic.version = 11 : i64} {
  func.func @_roll1_kernel(%arg0: memref<8x128xf32, #tpu.memory_space<vmem>>, %arg1: memref<8x128xf32, #tpu.memory_space<vmem>>) attributes {dimension_semantics = [], scalar_prefetch = 0 : i64, scratch_operands = 0 : i64, tpu.core_type = #tpu.core_type<tc>} {
    %c0 = arith.constant 0 : index
    %c0_0 = arith.constant 0 : index
    %0 = vector.load %arg0[%c0, %c0_0] : memref<8x128xf32, #tpu.memory_space<vmem>>, vector<8x128xf32>
    %c1_i32 = arith.constant 1 : i32
    %1 = tpu.dynamic_rotate %0 by %c1_i32 dim 1 : vector<8x128xf32>, i32 -> vector<8x128xf32>
    %c0_1 = arith.constant 0 : index
    %c0_2 = arith.constant 0 : index
    %2 = vector.load %arg1[%c0_1, %c0_2] : memref<8x128xf32, #tpu.memory_space<vmem>>, vector<8x128xf32>
    tpu.vector_store %arg1[%c0_1, %c0_2], %1 {strides = array<i32>} : memref<8x128xf32, #tpu.memory_space<vmem>>, vector<8x128xf32>,
    return
  }
}

</mosaic_0001>

<bundles_post_ra>
// kernel: tpu_custom_call.1
= control target key start
LH: loop header
LB: loop body
LE: loop exit
PB: predicated region body
PF: predicated region fallthrough
CT: control target
= control target key end

     0   :  { %6 = vsyncpa [#allocation3], 0  ;;  %s128_s0 = inlined_call_operand.hbm [shape: f32[8,128], index: 0, kind: input, shape index: {}]   ;;  %s129_s1 = inlined_call_operand.hbm [shape: f32[8,128], index: 1, kind: output, shape index: {}]  }
   0x1   :  { %7 = vsyncpa [#allocation4], 0  ;;  %s91_s6 = smov [#allocation2]   ;;  %s43_s10 = scalar_lea.hbm %s128_s0, 128 }
   0x2   :  { %s14_s7 = sshll.u32 %s91_s6, 4  ;;  %p44_p0 = scmp.ne.s32.totalorder %s128_s0, %s43_s10  ;;  %s15_s7 = int_to_ptr.vmem [resolvable:$true] %s14_s7 }
   0x3   :  { %p47_p1 = scmp.lt.u32.totalorder %s43_s10, %s128_s0 }
   0x5   :  { %p49_p2 = pnand %p47_p1, %p44_p0 }
   0x7   :  { %52 = shalt.err (!%p49_p2)
}
   0x8   :  { %s53_s15 = scalar_lea.vmem %s15_s7, 128  ;;  %p58_p4 = scmp.lt.s32.totalorder %s15_s7, %s15_s7 }
   0x9   :  { %p54_p3 = scmp.ne.s32.totalorder %s15_s7, %s53_s15  ;;  %p59_p5 = scmp.lt.s32.totalorder %s53_s15, %s53_s15 }
   0xb   :  { %p60_p6 = por %p59_p5, %p58_p4 }
   0xd   :  { %p61_p7 = pnand %p60_p6, %p54_p3 }
   0xf   :  { %64 = shalt.err (!%p61_p7)
}
  0x10   :  { %17 = dma.hbm_to_vmem [thread:$0]  %s128_s0, 128, %s15_s7, [#allocation3]  }
  0x11   :  { %87 = dma.done.wait [#allocation3], 128  }
  0x12   :  { %88 = vsyncadd [#allocation3], 4294967168  ;;  %v21_v0 = vld [vmem:[#allocation2] sm:$0xff]  ;;  %s92_s18 = smov 1   ;;  %s93_s19 = smov [#allocation5]  }
  0x13   :  { %22 = vrot.lane.b32.xlu0 %v21_v0, %s92_s18  ;;  %s31_s20 = sshll.u32 %s93_s19, 4  ;;  %s32_s20 = int_to_ptr.vmem [resolvable:$true] %s31_s20 }
  0x14   :  { %s65_s21 = scalar_lea.vmem %s32_s20, 128  ;;  %p70_p9 = scmp.lt.s32.totalorder %s32_s20, %s32_s20 }
  0x15   :  { %p66_p8 = scmp.ne.s32.totalorder %s32_s20, %s65_s21  ;;  %p71_p10 = scmp.lt.s32.totalorder %s65_s21, %s65_s21 }
  0x17   :  { %p72_p11 = por %p71_p10, %p70_p9 }
  0x19   :  { %p73_p12 = pnand %p72_p11, %p66_p8 }
  0x85   :  { %v23_v1 = vpop.permute.xlu0 %22 }
  0x86   :  { %24 = vst [vmem:[#allocation5] sm:$0xff] %v23_v1 }
  0x87   :  { %76 = shalt.err (!%p73_p12)
}
  0x88   :  { %s77_s0 = scalar_lea.hbm %s129_s1, 128 }
  0x89   :  { %p78_p13 = scmp.ne.s32.totalorder %s129_s1, %s77_s0  ;;  %p81_p0 = scmp.lt.u32.totalorder %s77_s0, %s129_s1 }
  0x8b   :  { %p83_p1 = pnand %p81_p0, %p78_p13 }
  0x8d   :  { %86 = shalt.err (!%p83_p1)
}
  0x8e   :  { %34 = dma.vmem_to_hbm [thread:$0]  %s32_s20, 128, %s129_s1, [#allocation4]  }
  0x8f   :  { %89 = dma.done.wait [#allocation4], 128  }
  0x90   :  { %90 = vsyncadd [#allocation4], 4294967168 }
  0x91   :  { %38 = vsyncpa [#allocation3], 1 }
  0x92   :  { %39 = vsyncpa [#allocation4], 1 }

</bundles_post_ra>
